<compile_context>
chip_gen: v6e
topology: v6e:2x2x1
jax: 0.10.0
libtpu: 0.0.40
codegen_flags: <defaults>
</compile_context>

<pallas_src>
import functools
import numpy as np

import jax
import jax.numpy as jnp
from jax import lax
from jax.experimental import pallas as pl
from jax.experimental.pallas import tpu as pltpu


# ------------------------------------------------------------------ small helpers


def _round_up(x, m):
    return ((x + m - 1) // m) * m


def _pair(v):
    return (v, v) if isinstance(v, int) else tuple(v)


_TM_CANDS = (128, 256, 384, 512)
_TK_CANDS = (128, 256, 384, 512)
_TN_CANDS = (128, 256)


def _pick_tile(d, align, cands):
    """Pick (tile, padded_dim): tile divides padded_dim, minimizing padding; ties -> larger tile."""
    dp = _round_up(d, align)
    if dp <= cands[-1]:
        return dp, dp
    best_t, best_p = None, None
    for c in cands:
        p = _round_up(d, c)
        if best_p is None or p < best_p or (p == best_p and c > best_t):
            best_t, best_p = c, p
    return best_t, best_p


def _apply_act(y, act):
    if act == "relu":
        return jnp.maximum(y, 0.0)
    if act == "tanh":
        return jnp.tanh(y)
    return y


# ------------------------------------------------------------------ fused matmul (+epilogue) kernels


def _mm_epilogue_kernel(a_ref, b_ref, s_ref, t_ref, o_ref, acc_ref, *, act):
    @pl.when(pl.program_id(2) == 0)
    def _():
        acc_ref[...] = jnp.zeros_like(acc_ref)

    acc_ref[...] += jnp.dot(a_ref[...], b_ref[...], preferred_element_type=jnp.float32)

    @pl.when(pl.program_id(2) == pl.num_programs(2) - 1)
    def _():
        o_ref[...] = _apply_act(acc_ref[...] * s_ref[...] + t_ref[...], act)


def _mm_epilogue_res_kernel(a_ref, b_ref, s_ref, t_ref, r_ref, o_ref, acc_ref, *, act):
    @pl.when(pl.program_id(2) == 0)
    def _():
        acc_ref[...] = jnp.zeros_like(acc_ref)

    acc_ref[...] += jnp.dot(a_ref[...], b_ref[...], preferred_element_type=jnp.float32)

    @pl.when(pl.program_id(2) == pl.num_programs(2) - 1)
    def _():
        o_ref[...] = _apply_act(r_ref[...] + acc_ref[...] * s_ref[...] + t_ref[...], act)


def matmul_affine(a, p, act="none", residual=None):
    """out = act((a @ w) * scale_c + shift_c [+ residual]); bf16 MXU inputs, f32 accumulation."""
    M, K = a.shape
    assert K == p["K"], (K, p["K"])
    w, s, t = p["w"], p["scale"], p["shift"]
    Kp, Np = w.shape
    tk, tn = p["tk"], p["tn"]
    tm, Mp = _pick_tile(M, 16, _TM_CANDS)

    a = a.astype(jnp.bfloat16)
    if Mp != M or Kp != K:
        a = jnp.pad(a, ((0, Mp - M), (0, Kp - K)))

    in_specs = [
        pl.BlockSpec((tm, tk), lambda i, j, k: (i, k)),
        pl.BlockSpec((tk, tn), lambda i, j, k: (k, j)),
        pl.BlockSpec((1, tn), lambda i, j, k: (0, j)),
        pl.BlockSpec((1, tn), lambda i, j, k: (0, j)),
    ]
    args = [a, w, s, t]
    if residual is None:
        kernel = functools.partial(_mm_epilogue_kernel, act=act)
    else:
        Nout = p["cout"]
        r = residual.astype(jnp.float32)
        if Mp != M or Np != Nout:
            r = jnp.pad(r, ((0, Mp - M), (0, Np - Nout)))
        in_specs.append(pl.BlockSpec((tm, tn), lambda i, j, k: (i, j)))
        args.append(r)
        kernel = functools.partial(_mm_epilogue_res_kernel, act=act)

    out = pl.pallas_call(
        kernel,
        out_shape=jax.ShapeDtypeStruct((Mp, Np), jnp.float32),
        grid=(Mp // tm, Np // tn, Kp // tk),
        in_specs=in_specs,
        out_specs=pl.BlockSpec((tm, tn), lambda i, j, k: (i, j)),
        scratch_shapes=[pltpu.VMEM((tm, tn), jnp.float32)],
        compiler_params=pltpu.CompilerParams(
            dimension_semantics=("parallel", "parallel", "arbitrary")),
    )(*args)
    return out[:M, :p["cout"]]


# ------------------------------------------------------------------ elementwise add kernel (lane-dense)


def _add_act_kernel(a_ref, b_ref, o_ref, *, act):
    o_ref[...] = _apply_act(a_ref[...] + b_ref[...], act)


def add_act(a, b, act="none"):
    """Elementwise act(a + b), flattened to lane-dense (rows, 128) tiles."""
    assert a.shape == b.shape, (a.shape, b.shape)
    shape = a.shape
    T = int(np.prod(shape))
    R = -(-T // 128)
    tr, Rp = _pick_tile(R, 8, (256, 512, 1024, 2048))
    Tp = Rp * 128
    af = a.reshape(-1)
    bf = b.reshape(-1)
    if Tp != T:
        af = jnp.pad(af, (0, Tp - T))
        bf = jnp.pad(bf, (0, Tp - T))
    out = pl.pallas_call(
        functools.partial(_add_act_kernel, act=act),
        out_shape=jax.ShapeDtypeStruct((Rp, 128), jnp.float32),
        grid=(Rp // tr,),
        in_specs=[pl.BlockSpec((tr, 128), lambda i: (i, 0)),
                  pl.BlockSpec((tr, 128), lambda i: (i, 0))],
        out_specs=pl.BlockSpec((tr, 128), lambda i: (i, 0)),
        compiler_params=pltpu.CompilerParams(dimension_semantics=("parallel",)),
    )(af.reshape(Rp, 128), bf.reshape(Rp, 128))
    return out.reshape(-1)[:T].reshape(shape)


# ------------------------------------------------------------------ InstanceNorm2d(affine=False)+ReLU


def _inorm_relu_kernel(x_ref, o_ref):
    # Fallback path: (1, HW, C) block (masked lanes when C < 128).
    x = x_ref[...]
    m = jnp.mean(x, axis=1, keepdims=True)
    v = jnp.mean(jnp.square(x - m), axis=1, keepdims=True)   # biased variance (PyTorch InstanceNorm)
    o_ref[...] = jnp.maximum((x - m) * lax.rsqrt(v + 1e-5), 0.0)


def _lane_group_allsum(v, groups, channels):
    """v: (1, groups*channels) per-lane partial sums -> per-channel totals broadcast to all groups."""
    total = v
    for g in range(1, groups):
        total = total + pltpu.roll(v, shift=g * channels, axis=1)
    return total


def _inorm_relu_group_kernel(x_ref, o_ref, *, groups, channels, inv_hw):
    x = x_ref[0]                                             # (HW//G, G*C) with G*C == 128
    s1 = jnp.sum(x, axis=0, keepdims=True)                   # (1, 128)
    m = _lane_group_allsum(s1, groups, channels) * inv_hw    # per-channel mean, lane-broadcast
    d = x - m
    s2 = jnp.sum(d * d, axis=0, keepdims=True)
    v = _lane_group_allsum(s2, groups, channels) * inv_hw    # biased variance (PyTorch InstanceNorm)
    o_ref[0] = jnp.maximum(d * lax.rsqrt(v + 1e-5), 0.0)


def instance_norm_relu(x):
    """InstanceNorm2d(affine=False, eps=1e-5) followed by ReLU, NHWC f32 input."""
    N, H, W, C = x.shape
    hw = H * W
    if C <= 128 and 128 % C == 0 and hw % (128 // C) == 0:
        G = 128 // C
        # pure row-major reshape: pack G consecutive pixels into the 128-lane axis (lane-dense IO).
        x3 = x.reshape(N, hw // G, G * C)
        out = pl.pallas_call(
            functools.partial(_inorm_relu_group_kernel, groups=G, channels=C, inv_hw=1.0 / hw),
            out_shape=jax.ShapeDtypeStruct(x3.shape, jnp.float32),
            grid=(N,),
            in_specs=[pl.BlockSpec((1, hw // G, G * C), lambda n: (n, 0, 0))],
            out_specs=pl.BlockSpec((1, hw // G, G * C), lambda n: (n, 0, 0)),
            compiler_params=pltpu.CompilerParams(dimension_semantics=("parallel",)),
        )(x3)
        return out.reshape(N, H, W, C)
    x3 = x.reshape(N, hw, C)
    out = pl.pallas_call(
        _inorm_relu_kernel,
        out_shape=jax.ShapeDtypeStruct((N, hw, C), jnp.float32),
        grid=(N,),
        in_specs=[pl.BlockSpec((1, hw, C), lambda n: (n, 0, 0))],
        out_specs=pl.BlockSpec((1, hw, C), lambda n: (n, 0, 0)),
    )(x3)
    return out.reshape(N, H, W, C)


# ------------------------------------------------------------------ conv / pooling / pad glue


def conv_apply(x, p, act="none", residual=None):
    """NHWC conv via (1x1: direct, else im2col in bf16) + fused-epilogue Pallas matmul."""
    kh, kw = p["kh"], p["kw"]
    sh, sw = p["stride"]
    ph, pw = p["padding"]
    xb = x.astype(jnp.bfloat16)
    if ph or pw:
        xb = jnp.pad(xb, ((0, 0), (ph, ph), (pw, pw), (0, 0)))
    N, H, W, C = xb.shape
    oh = (H - kh) // sh + 1
    ow = (W - kw) // sw + 1
    if kh == 1 and kw == 1 and sh == 1 and sw == 1:
        a = xb.reshape(N * oh * ow, C)
    else:
        cols = [xb[:, i:i + sh * (oh - 1) + 1:sh, j:j + sw * (ow - 1) + 1:sw, :]
                for i in range(kh) for j in range(kw)]
        a = jnp.concatenate(cols, axis=-1).reshape(N * oh * ow, kh * kw * C)
    r2 = None if residual is None else residual.reshape(N * oh * ow, p["cout"])
    y = matmul_affine(a, p, act=act, residual=r2)
    return y.reshape(N, oh, ow, p["cout"])


def basic_conv(x, p):
    """InceptionResNetV2 BasicConv2d: Conv(bias=False) + BatchNorm(eps=1e-3, folded) + ReLU (fused)."""
    return conv_apply(x, p, act="relu")


def maxpool_3x3_s2(x):
    N, H, W, C = x.shape
    oh = (H - 3) // 2 + 1
    ow = (W - 3) // 2 + 1
    out = None
    for i in range(3):
        for j in range(3):
            patch = x[:, i:i + 2 * (oh - 1) + 1:2, j:j + 2 * (ow - 1) + 1:2, :]
            out = patch if out is None else jnp.maximum(out, patch)
    return out


def avgpool_3x3_s1_p1(x):
    """AvgPool2d(3, stride=1, padding=1, count_include_pad=False)."""
    N, H, W, C = x.shape
    xp = jnp.pad(x, ((0, 0), (1, 1), (1, 1), (0, 0)))
    cp = jnp.pad(jnp.ones((1, H, W, 1), jnp.float32), ((0, 0), (1, 1), (1, 1), (0, 0)))
    s = jnp.zeros_like(x)
    c = jnp.zeros((1, H, W, 1), jnp.float32)
    for i in range(3):
        for j in range(3):
            s = s + xp[:, i:i + H, j:j + W, :]
            c = c + cp[:, i:i + H, j:j + W, :]
    return s / c


def reflect_pad(x, left, right, top, bottom):
    # F.pad(..., (left, right, top, bottom), 'reflect') on NCHW == pad H by (top,bottom), W by (left,right)
    return jnp.pad(x, ((0, 0), (top, bottom), (left, right), (0, 0)), mode="reflect")


def upsample_nearest(x, s):
    if s == 1:
        return x
    return jnp.repeat(jnp.repeat(x, s, axis=1), s, axis=2)


# ------------------------------------------------------------------ parameters


class _Rng:
    def __init__(self, key):
        self._key = key

    def next(self):
        self._key, sub = jax.random.split(self._key)
        return sub


def conv_layer(rng, cin, cout, k, stride=1, padding=0, bias=True, bn=False, res_scale=None):
    """Conv parameters with the epilogue (bias / folded BN / residual scale) pre-folded and
    the weight / scale / shift pre-padded to the layer's tile grid (stored once, bf16 weight)."""
    kh, kw = _pair(k)
    K = kh * kw * cin
    w = jax.random.normal(rng.next(), (K, cout), jnp.float32) / np.sqrt(K)
    use_bias = bias and not bn
    b = (0.01 * jax.random.normal(rng.next(), (cout,), jnp.float32)) if use_bias \
        else jnp.zeros((cout,), jnp.float32)
    if bn:
        # BN eval-mode fold: gamma=1, beta=0, running_mean=0, running_var=1, eps=1e-3
        scale = jnp.full((cout,), 1.0 / np.sqrt(1.0 + 1e-3), jnp.float32)
        shift = jnp.zeros((cout,), jnp.float32)
    elif res_scale is not None:
        scale = jnp.full((cout,), res_scale, jnp.float32)
        shift = res_scale * b
    else:
        scale = jnp.ones((cout,), jnp.float32)
        shift = b
    tk, Kp = _pick_tile(K, 128, _TK_CANDS)
    tn, Np = _pick_tile(cout, 128, _TN_CANDS)
    return {
        "w": jnp.pad(w, ((0, Kp - K), (0, Np - cout))).astype(jnp.bfloat16),
        "scale": jnp.pad(scale, (0, Np - cout)).reshape(1, Np),
        "shift": jnp.pad(shift, (0, Np - cout)).reshape(1, Np),
        "kh": kh, "kw": kw, "K": K, "cout": cout,
        "stride": _pair(stride), "padding": _pair(padding),
        "tk": tk, "tn": tn,
    }


def make_params(nf, key):
    rng = _Rng(key)

    def C(ci, co, k, s=1, p=0, bias=True, rs=None):
        return conv_layer(rng, ci, co, k, s, p, bias=bias, res_scale=rs)

    def B(ci, co, k, s=1, p=0):
        return conv_layer(rng, ci, co, k, s, p, bias=False, bn=True)

    fpn = {
        "toRGB": C(nf, 3, 1),
        # InceptionResNetV2 stem
        "c1a": B(3, 32, 3, 2, 0),
        "c2a": B(32, 32, 3, 1, 0),
        "c2b": B(32, 64, 3, 1, 1),
        "c3b": B(64, 80, 1, 1, 0),
        "c4a": B(80, 192, 3, 1, 0),
        # Mixed_5b
        "m5b": {"b0": B(192, 96, 1), "b1_0": B(192, 48, 1), "b1_1": B(48, 64, 5, 1, 2),
                "b2_0": B(192, 64, 1), "b2_1": B(64, 96, 3, 1, 1), "b2_2": B(96, 96, 3, 1, 1),
                "b3": B(192, 64, 1)},
        # 10 x Block35 (scale 0.17)
        "rep35": [{"b0": B(320, 32, 1), "b1_0": B(320, 32, 1), "b1_1": B(32, 32, 3, 1, 1),
                   "b2_0": B(320, 32, 1), "b2_1": B(32, 48, 3, 1, 1), "b2_2": B(48, 64, 3, 1, 1),
                   "up": C(128, 320, 1, rs=0.17)} for _ in range(10)],
        # Mixed_6a
        "m6a": {"b0": B(320, 384, 3, 2, 0), "b1_0": B(320, 256, 1),
                "b1_1": B(256, 256, 3, 1, 1), "b1_2": B(256, 384, 3, 2, 0)},
        # 20 x Block17 (scale 0.10)
        "rep17": [{"b0": B(1088, 192, 1), "b1_0": B(1088, 128, 1),
                   "b1_1": B(128, 160, (1, 7), 1, (0, 3)), "b1_2": B(160, 192, (7, 1), 1, (3, 0)),
                   "up": C(384, 1088, 1, rs=0.10)} for _ in range(20)],
        # Mixed_7a
        "m7a": {"b0_0": B(1088, 256, 1), "b0_1": B(256, 384, 3, 2, 0),
                "b1_0": B(1088, 256, 1), "b1_1": B(256, 288, 3, 2, 0),
                "b2_0": B(1088, 256, 1), "b2_1": B(256, 288, 3, 1, 1), "b2_2": B(288, 320, 3, 2, 0)},
        # FPN laterals / top-down
        "lat4": C(2080, nf, 1, bias=False), "lat3": C(1088, nf, 1, bias=False),
        "lat2": C(192, nf, 1, bias=False), "lat1": C(64, nf, 1, bias=False),
        "lat0": C(32, nf, 1, bias=False),
        "td1": C(nf, nf, 3, 1, 1), "td2": C(nf, nf, 3, 1, 1), "td3": C(nf, nf, 3, 1, 1),
    }
    params = {"fpn": fpn}
    for i in (1, 2, 3, 4):
        params[f"head{i}"] = {"b0": C(nf, nf, 3, 1, 1, bias=False),
                              "b1": C(nf, nf, 3, 1, 1, bias=False)}
    params["smooth"] = C(4 * nf, nf, 3, 1, 1)
    params["smooth2"] = C(nf, nf // 2, 3, 1, 1)
    params["final"] = C(nf // 2, 3, 3, 1, 1)
    params["final2"] = C(3, nf, 1)
    return params


# ------------------------------------------------------------------ InceptionResNetV2 blocks


def mixed_5b(x, p):
    b0 = basic_conv(x, p["b0"])
    b1 = basic_conv(basic_conv(x, p["b1_0"]), p["b1_1"])
    b2 = basic_conv(basic_conv(basic_conv(x, p["b2_0"]), p["b2_1"]), p["b2_2"])
    b3 = basic_conv(avgpool_3x3_s1_p1(x), p["b3"])
    return jnp.concatenate([b0, b1, b2, b3], axis=-1)          # 320 ch


def block35(x, p):
    b0 = basic_conv(x, p["b0"])
    b1 = basic_conv(basic_conv(x, p["b1_0"]), p["b1_1"])
    b2 = basic_conv(basic_conv(basic_conv(x, p["b2_0"]), p["b2_1"]), p["b2_2"])
    cat = jnp.concatenate([b0, b1, b2], axis=-1)               # 128 ch
    # relu(x + scale * (conv1x1(cat) + b)) fully fused into the matmul epilogue.
    return conv_apply(cat, p["up"], act="relu", residual=x)


def mixed_6a(x, p):
    b0 = basic_conv(x, p["b0"])
    b1 = basic_conv(basic_conv(basic_conv(x, p["b1_0"]), p["b1_1"]), p["b1_2"])
    b2 = maxpool_3x3_s2(x)
    return jnp.concatenate([b0, b1, b2], axis=-1)              # 1088 ch


def block17(x, p):
    b0 = basic_conv(x, p["b0"])
    b1 = basic_conv(basic_conv(basic_conv(x, p["b1_0"]), p["b1_1"]), p["b1_2"])
    cat = jnp.concatenate([b0, b1], axis=-1)                   # 384 ch
    return conv_apply(cat, p["up"], act="relu", residual=x)


def mixed_7a(x, p):
    b0 = basic_conv(basic_conv(x, p["b0_0"]), p["b0_1"])
    b1 = basic_conv(basic_conv(x, p["b1_0"]), p["b1_1"])
    b2 = basic_conv(basic_conv(basic_conv(x, p["b2_0"]), p["b2_1"]), p["b2_2"])
    b3 = maxpool_3x3_s2(x)
    return jnp.concatenate([b0, b1, b2, b3], axis=-1)          # 2080 ch


# ------------------------------------------------------------------ FPN / heads / full forward


def conv_norm_relu(x, p):
    # Conv2d(3x3, pad=1, bias) -> InstanceNorm2d(affine=False) -> ReLU   (td / smooth blocks)
    return instance_norm_relu(conv_apply(x, p, act="none"))


def fpn_forward(P, x):
    x1 = conv_apply(x, P["toRGB"])                              # 1x1 + bias (fused) -> 3ch
    enc0 = basic_conv(x1, P["c1a"])                             # 32 ch
    e = basic_conv(basic_conv(enc0, P["c2a"]), P["c2b"])
    enc1 = maxpool_3x3_s2(e)                                    # 64 ch
    e = basic_conv(basic_conv(enc1, P["c3b"]), P["c4a"])
    enc2 = maxpool_3x3_s2(e)                                    # 192 ch
    e = mixed_5b(enc2, P["m5b"])
    for bp in P["rep35"]:
        e = block35(e, bp)
    enc3 = mixed_6a(e, P["m6a"])                                # 1088 ch
    e = enc3
    for bp in P["rep17"]:
        e = block17(e, bp)
    enc4 = mixed_7a(e, P["m7a"])                                # 2080 ch

    lateral4 = reflect_pad(conv_apply(enc4, P["lat4"]), 1, 1, 1, 1)
    lateral3 = reflect_pad(conv_apply(enc3, P["lat3"]), 1, 1, 1, 1)
    lateral2 = conv_apply(enc2, P["lat2"])
    lateral1 = reflect_pad(conv_apply(enc1, P["lat1"]), 1, 1, 1, 1)
    lateral0 = conv_apply(enc0, P["lat0"])

    map4 = lateral4
    map3 = conv_norm_relu(add_act(lateral3, upsample_nearest(map4, 2)), P["td1"])
    map2 = conv_norm_relu(
        add_act(reflect_pad(lateral2, 1, 2, 1, 2), upsample_nearest(map3, 2)), P["td2"])
    map1 = conv_norm_relu(add_act(lateral1, upsample_nearest(map2, 2)), P["td3"])
    map0 = reflect_pad(lateral0, 0, 1, 0, 1)
    return map0, map1, map2, map3, map4


def fpn_head(x, p):
    y = conv_apply(x, p["b0"], act="relu")
    y = conv_apply(y, p["b1"], act="relu")
    return y


def fpn_inception_forward(params, x, x1):
    """x: (N, n_feats, H, W) NCHW; x1: (N, 3, H, W) NCHW; returns (N, n_feats, H, W) NCHW."""
    xh = jnp.transpose(x, (0, 2, 3, 1)).astype(jnp.float32)
    x1h = jnp.transpose(x1, (0, 2, 3, 1)).astype(jnp.float32)

    map0, map1, map2, map3, map4 = fpn_forward(params["fpn"], xh)

    m4 = upsample_nearest(fpn_head(map4, params["head4"]), 8)
    m3 = upsample_nearest(fpn_head(map3, params["head3"]), 4)
    m2 = upsample_nearest(fpn_head(map2, params["head2"]), 2)
    m1 = fpn_head(map1, params["head1"])

    smoothed = conv_norm_relu(jnp.concatenate([m4, m3, m2, m1], axis=-1), params["smooth"])
    smoothed = upsample_nearest(smoothed, 2)
    smoothed = conv_norm_relu(add_act(smoothed, map0), params["smooth2"])
    smoothed = upsample_nearest(smoothed, 2)

    final = conv_apply(smoothed, params["final"])               # 3x3 + bias (fused)
    res = add_act(final, x1h)
    res2 = conv_apply(res, params["final2"], act="tanh")        # 1x1 + bias + tanh (fused)
    return jnp.transpose(res2, (0, 3, 1, 2))


# ------------------------------------------------------------------ main


if __name__ == "__main__":
    root = jax.random.PRNGKey(0)
    k_params, k_x, k_x1 = jax.random.split(root, 3)

    n_feats = 32
    # 128 is the smallest spatial size compatible with the InceptionResNetV2 stem's valid
    # convolutions and the FPN's reflection-pad / nearest-upsample shape arithmetic
    # (enc4 must be >= 2x2 for ReflectionPad2d(1)).
    N, S = 1, 128

    params = make_params(n_feats, k_params)
    x = jax.random.normal(k_x, (N, n_feats, S, S), jnp.float32)   # NCHW, like PyTorch
    x1 = jax.random.normal(k_x1, (N, 3, S, S), jnp.float32)       # NCHW, like PyTorch

    out = fpn_inception_forward(params, x, x1)
    out = jax.block_until_ready(out)

    assert out.shape == (N, n_feats, S, S), out.shape
    assert bool(jnp.all(jnp.isfinite(out)))
    assert bool(jnp.all(jnp.abs(out) <= 1.0))   # tanh output range
    print("KERNEL_OK")
</pallas_src>

<mosaic_0001>
module attributes {stable_mosaic.version = 11 : i64} {
  func.func @_mm_epilogue_kernel(%arg0: i32, %arg1: i32, %arg2: i32, %arg3: memref<512x128xbf16, #tpu.memory_space<vmem>>, %arg4: memref<128x128xbf16, #tpu.memory_space<vmem>>, %arg5: memref<1x128xf32, #tpu.memory_space<vmem>>, %arg6: memref<1x128xf32, #tpu.memory_space<vmem>>, %arg7: memref<512x128xf32, #tpu.memory_space<vmem>>, %arg8: memref<512x128xf32, #tpu.memory_space<vmem>>) attributes {dimension_semantics = [#tpu.dimension_semantics<parallel>, #tpu.dimension_semantics<parallel>, #tpu.dimension_semantics<arbitrary>], iteration_bounds = array<i64: 32, 1, 1>, scalar_prefetch = 0 : i64, scratch_operands = 1 : i64, tpu.core_type = #tpu.core_type<tc>, window_params = [{transform_indices = @transform_0, window_bounds = array<i64: 512, 128>}, {transform_indices = @transform_1, window_bounds = array<i64: 128, 128>}, {transform_indices = @transform_2, window_bounds = array<i64: 1, 128>}, {transform_indices = @transform_3, window_bounds = array<i64: 1, 128>}, {transform_indices = @transform_4, window_bounds = array<i64: 512, 128>}]} {
    %c0_i32 = arith.constant 0 : i32
    %0 = arith.cmpi eq, %arg2, %c0_i32 : i32
    %1 = arith.extui %0 : i1 to i32
    %c0_i32_0 = arith.constant 0 : i32
    %2 = arith.cmpi ne, %1, %c0_i32_0 : i32
    scf.if %2 {
      %cst_10 = arith.constant 0.000000e+00 : f32
      %12 = vector.broadcast %cst_10 : f32 to vector<512x128xf32>
      %c0_11 = arith.constant 0 : index
      %c0_12 = arith.constant 0 : index
      %13 = vector.load %arg8[%c0_11, %c0_12] : memref<512x128xf32, #tpu.memory_space<vmem>>, vector<512x128xf32>
      tpu.vector_store %arg8[%c0_11, %c0_12], %12 {strides = array<i32>} : memref<512x128xf32, #tpu.memory_space<vmem>>, vector<512x128xf32>,
    } else {
    }
    %c0 = arith.constant 0 : index
    %c0_1 = arith.constant 0 : index
    %3 = vector.load %arg8[%c0, %c0_1] : memref<512x128xf32, #tpu.memory_space<vmem>>, vector<512x128xf32>
    %c0_2 = arith.constant 0 : index
    %c0_3 = arith.constant 0 : index
    %4 = vector.load %arg3[%c0_2, %c0_3] : memref<512x128xbf16, #tpu.memory_space<vmem>>, vector<512x128xbf16>
    %c0_4 = arith.constant 0 : index
    %c0_5 = arith.constant 0 : index
    %5 = vector.load %arg4[%c0_4, %c0_5] : memref<128x128xbf16, #tpu.memory_space<vmem>>, vector<128x128xbf16>
    %cst = arith.constant dense<0.000000e+00> : vector<512x128xf32>
    %6 = tpu.matmul %4, %5, %cst {dimension_numbers = #tpu.dot_dimension_numbers<[1], [0], [0], [1], [0, 0, 1, 1], [], []>} : vector<512x128xbf16>, vector<128x128xbf16>, vector<512x128xf32> -> vector<512x128xf32>
    %7 = arith.addf %3, %6 : vector<512x128xf32>
    %c0_6 = arith.constant 0 : index
    %c0_7 = arith.constant 0 : index
    %8 = vector.load %arg8[%c0_6, %c0_7] : memref<512x128xf32, #tpu.memory_space<vmem>>, vector<512x128xf32>
    tpu.vector_store %arg8[%c0_6, %c0_7], %7 {strides = array<i32>} : memref<512x128xf32, #tpu.memory_space<vmem>>, vector<512x128xf32>,
    %c0_i32_8 = arith.constant 0 : i32
    %9 = arith.cmpi eq, %arg2, %c0_i32_8 : i32
    %10 = arith.extui %9 : i1 to i32
    %c0_i32_9 = arith.constant 0 : i32
    %11 = arith.cmpi ne, %10, %c0_i32_9 : i32
    scf.if %11 {
      %c0_10 = arith.constant 0 : index
      %c0_11 = arith.constant 0 : index
      %12 = vector.load %arg8[%c0_10, %c0_11] : memref<512x128xf32, #tpu.memory_space<vmem>>, vector<512x128xf32>
      %c0_12 = arith.constant 0 : index
      %c0_13 = arith.constant 0 : index
      %13 = vector.load %arg5[%c0_12, %c0_13] : memref<1x128xf32, #tpu.memory_space<vmem>>, vector<1x128xf32>
      %14 = vector.broadcast %13 : vector<1x128xf32> to vector<512x128xf32>
      %15 = arith.mulf %12, %14 : vector<512x128xf32>
      %c0_14 = arith.constant 0 : index
      %c0_15 = arith.constant 0 : index
      %16 = vector.load %arg6[%c0_14, %c0_15] : memref<1x128xf32, #tpu.memory_space<vmem>>, vector<1x128xf32>
      %17 = vector.broadcast %16 : vector<1x128xf32> to vector<512x128xf32>
      %18 = arith.addf %15, %17 : vector<512x128xf32>
      %c0_16 = arith.constant 0 : index
      %c0_17 = arith.constant 0 : index
      %19 = vector.load %arg7[%c0_16, %c0_17] : memref<512x128xf32, #tpu.memory_space<vmem>>, vector<512x128xf32>
      tpu.vector_store %arg7[%c0_16, %c0_17], %18 {strides = array<i32>} : memref<512x128xf32, #tpu.memory_space<vmem>>, vector<512x128xf32>,
    } else {
    }
    return
  }
  func.func @transform_0(%arg0: i32, %arg1: i32, %arg2: i32) -> (i32, i32) {
    %c0_i32 = arith.constant 0 : i32
    return %arg0, %arg2 : i32, i32
  }
  func.func @transform_1(%arg0: i32, %arg1: i32, %arg2: i32) -> (i32, i32) {
    %c0_i32 = arith.constant 0 : i32
    return %arg2, %arg1 : i32, i32
  }
  func.func @transform_2(%arg0: i32, %arg1: i32, %arg2: i32) -> (i32, i32) {
    %c0_i32 = arith.constant 0 : i32
    %c0_i32_0 = arith.constant 0 : i32
    return %c0_i32, %arg1 : i32, i32
  }
  func.func @transform_3(%arg0: i32, %arg1: i32, %arg2: i32) -> (i32, i32) {
    %c0_i32 = arith.constant 0 : i32
    %c0_i32_0 = arith.constant 0 : i32
    return %c0_i32, %arg1 : i32, i32
  }
  func.func @transform_4(%arg0: i32, %arg1: i32, %arg2: i32) -> (i32, i32) {
    %c0_i32 = arith.constant 0 : i32
    return %arg0, %arg1 : i32, i32
  }
}

</mosaic_0001>

<bundles_post_ra>
// kernel: tpu_custom_call.1
= control target key start
LH: loop header
LB: loop body
LE: loop exit
PB: predicated region body
PF: predicated region fallthrough
CT: control target
= control target key end

     0   :  { %9 = vsyncpa [#allocation4], 0  ;;  %s2597_s0 = inlined_call_operand.hbm [shape: bf16[16384,128], index: 0, kind: input, shape index: {}]   ;;  %s2598_s1 = inlined_call_operand.hbm [shape: bf16[128,128], index: 1, kind: input, shape index: {}]   ;;  %s2599_s2 = inlined_call_operand.hbm [shape: f32[1,128], index: 2, kind: input, shape index: {}]   ;;  %s2600_s3 = inlined_call_operand.hbm [shape: f32[1,128], index: 3, kind: input, shape index: {}]   ;;  %s2601_s4 = inlined_call_operand.hbm [shape: f32[16384,128], index: 4, kind: output, shape index: {}]  }
   0x1   :  { %11 = vsyncpa [#allocation4 + $0x1], 0 }
   0x2   :  { %12 = vsyncpa [#allocation7], 0 }
   0x3   :  { %13 = vsyncpa [#allocation10], 0 }
   0x4   :  { %14 = vsyncpa [#allocation5], 0 }
   0x5   :  { %16 = vsyncpa [#allocation5 + $0x1], 0  ;;  %s2159_s15 = smov 0   ;;  %s2161_s16 = smov 0  }
   0x6   :  { %s2163_s17 = smov 0   ;;  %s2165_s18 = smov 0  }
   0x7   :  { %s2167_s19 = smov 0   ;;  %s2169_s20 = smov 0  }
   0x8 LB: > { %s1591_s21 = sadd.s32 4294967295, %s2123_s20   ;;  %s1592_s22 = sadd.s32 4294967294, %s2123_s20   ;;  %s2123_s20 = sphi %s2169_s20, %s22_s20   ;;  %s2119_s19 = sphi %s2167_s19, %s2624_s19   ;;  %s2115_s18 = sphi %s2165_s18, %s2623_s18   ;;  %s2111_s17 = sphi %s2163_s17, %s2622_s17   ;;  %s2107_s16 = sphi %s2161_s16, %s2621_s16   ;;  %s2103_s15 = sphi %s2159_s15, %s2620_s15  }
   0x9   : > { %p63_p0 = scmp.ne.s32.totalorder %s2107_s16, %s2103_s15  ;;  %p2193_p1 = scmp.eq.s32.totalorder %s1591_s21, 0 }
   0xa   : > { %p2197_p2 = scmp.eq.s32.totalorder %s1591_s21, 31  ;;  %p175_p3 = scmp.eq.s32.totalorder %s1592_s22, 31 }
   0xb   : > { %s2607_s23 = scalar_select %p2193_p1, 1, 0 }
   0xc   : > { %p2203_p4 = por %p2193_p1, %p63_p0  ;;  %p1593_p5 = scmp.ge.s32.totalorder %s2123_s20, 1 }
   0xd   : > { %p2208_p6 = por %p175_p3, %p63_p0  ;;  %p182_p7 = scmp.lt.s32.totalorder %s2123_s20, 33 }
   0xe   : > { %s2609_s25 = scalar_select %p2203_p4, 1, 0 }
   0xf   : > { %s2610_s26 = scalar_select %p2208_p6, 1, 0 }
  0x10   : > { %p2213_p8 = pnand %p1593_p5, %p182_p7  ;;  %s2125_s28 = smov [#allocation6]  }
  0x11   : > { %s198_s29 = sshll.u32 %s2125_s28, 4  ;;  %s2126_s5 = smov [#allocation8]   ;;  %s199_s29 = int_to_ptr.vmem [resolvable:$true] %s198_s29 }
  0x12   : > { %p1808_p9 = pneg %p2213_p8  ;;  %s214_s6 = sshll.u32 %s2126_s5, 4  ;;  %s215_s6 = int_to_ptr.vmem [resolvable:$true] %s214_s6 }
  0x13   : > { %s2127_s7 = smov [#allocation9]   ;;  %s1940_s9 = scalar_lea.vmem %s199_s29, 1024 }
  0x14   : > { %p2221_p10 = pnand %p1808_p9, %p2193_p1  ;;  %s227_s8 = sshll.u32 %s2127_s7, 4  ;;  %s228_s8 = int_to_ptr.vmem [resolvable:$true] %s227_s8 }
  0x15   : > { %p1941_p12 = scmp.ne.s32.totalorder %s199_s29, %s1940_s9  ;;  %p1948_p3 = scmp.lt.s32.totalorder %s199_s29, %s199_s29 }
  0x16   : > { %p1931_p11 = pneg %p2221_p10  ;;  %p1949_p5 = scmp.lt.s32.totalorder %s1940_s9, %s1940_s9 }
  0x18   : > { %p1943_p13 = pnand %p1941_p12, %p1931_p11  ;;  %p1950_p7 = por %p1949_p5, %p1948_p3 }
  0x1a   : > { %p1944_p0 = pneg %p1943_p13 }
  0x1c   : > { %p1951_p9 = pnand %p1950_p7, %p1944_p0 }
  0x1e   : > { %1954 = shalt.err (!%p1951_p9)
}
  0x1f   : > { %s2605_s10 = smov 64   ;;  %s2606_s11 = smov 4  }
  0x20   : > { %1811 = dma.hbm_to_vmem [thread:$0]  (!%p2221_p10), %s2598_s1, 1024, %s199_s29, [#allocation7], %s2605_s10, %s2605_s10, %s2606_s11  }
  0x21   : > { %s1966_s14 = scalar_lea.vmem %s215_s6, 16  ;;  %s1973_s21 = scalar_lea.vmem %s215_s6, 32 }
  0x22   : > { %p1967_p12 = scmp.ne.s32.totalorder %s215_s6, %s1966_s14  ;;  %p1974_p0 = scmp.lt.s32.totalorder %s215_s6, %s215_s6 }
  0x23   : > { %p1975_p5 = scmp.lt.s32.totalorder %s1973_s21, %s1966_s14 }
  0x24   : > { %p1969_p13 = pnand %p1967_p12, %p1931_p11 }
  0x25   : > { %p1976_p7 = por %p1975_p5, %p1974_p0 }
  0x26   : > { %p1970_p3 = pneg %p1969_p13 }
  0x28   : > { %p1977_p9 = pnand %p1976_p7, %p1970_p3 }
  0x2a   : > { %1980 = shalt.err (!%p1977_p9)
}
  0x2b   : > { %1814 = dma.hbm_to_vmem [thread:$0]  (!%p2221_p10), %s2599_s2, 16, %s215_s6, [#allocation7]  }
  0x2c   : > { %s1992_s29 = scalar_lea.vmem %s228_s8, 16  ;;  %s1999_s5 = scalar_lea.vmem %s228_s8, 32 }
  0x2d   : > { %p1993_p6 = scmp.ne.s32.totalorder %s228_s8, %s1992_s29  ;;  %p2000_p1 = scmp.lt.s32.totalorder %s228_s8, %s228_s8 }
  0x2e   : > { %p2001_p4 = scmp.lt.s32.totalorder %s1999_s5, %s1992_s29 }
  0x2f   : > { %p1995_p12 = pnand %p1993_p6, %p1931_p11 }
  0x30   : > { %p2002_p0 = por %p2001_p4, %p2000_p1 }
  0x31   : > { %p1996_p13 = pneg %p1995_p12 }
  0x33   : > { %p2003_p3 = pnand %p2002_p0, %p1996_p13 }
  0x35   : > { %2006 = shalt.err (!%p2003_p3)
}
  0x36   : > { %1817 = dma.hbm_to_vmem [thread:$0]  (!%p2221_p10), %s2600_s3, 16, %s228_s8, [#allocation10]  }
  0x37   : > { %s50_s6 = sadd.s32 1, %s2111_s17  ;;  %s41_s12 = sadd.s32 1, %s2119_s19 }
  0x38   : > { %p57_p1 = scmp.ne.s32.totalorder %s2111_s17, %s2107_s16  ;;  %p43_p4 = scmp.ge.s32.totalorder %s41_s12, 32 }
  0x39   : > { %p58_p6 = scmp.eq.s32.totalorder %s2123_s20, 0  ;;  %p1829_p5 = scmp.lt.s32.totalorder %s2123_s20, 32 }
  0x3a   : > { %p2261_p11 = por %p2197_p2, %p57_p1  ;;  %s2626_s12 = smov (%p43_p4, %s41_s12), 0 }
  0x3b   : > { %p59_p7 = por %p58_p6, %p57_p1  ;;  %s238_s13 = sand.u32 1, %s2111_s17  }
  0x3c   : > { %s45_s14 = ssub.s32 %s2119_s19, %s2626_s12  ;;  %s1598_s8 = sshll.u32 %s238_s13, 8 }
  0x3d   : > { %p48_p9 = scmp.eq.s32.totalorder %s45_s14, 0  ;;  %s1654_s21 = sshll.u32 %s2119_s19, 12 }
  0x3e   : > { %s249_s24 = scalar_lea.hbm %s2597_s0, %s1654_s21  ;;  %s242_s5 = scalar_lea.vmem [#allocation3], %s1598_s8 }
  0x3f   : > { %s2273_s22 = scalar_select %p48_p9, %s2111_s17, %s50_s6  }
  0x40   : > { %s250_s7 = sshll.u32 %s242_s5, 4  ;;  %p2280_p2 = pnand %p1829_p5, %p59_p7  ;;  %s251_s7 = int_to_ptr.vmem [resolvable:$true] %s250_s7 }
  0x41   : > { %s239_s10 = scalar_lea.sflag [#allocation4], %s238_s13  ;;  %s2020_s14 = scalar_lea.vmem %s251_s7, 4096 }
  0x42   : > { %p2009_p10 = pneg %p2280_p2  ;;  %p2021_p12 = scmp.ne.s32.totalorder %s251_s7, %s2020_s14 }
  0x43   : > { %s2130_s6 = smov [#allocation3]  }
  0x44   : > { %p2023_p13 = pnand %p2021_p12, %p2009_p10  ;;  %s2025_s11 = sshll.u32 %s2130_s6, 4  ;;  %s2026_s11 = int_to_ptr.vmem [resolvable:$false] %s2025_s11 }
  0x45   : > { %s2027_s21 = scalar_lea.vmem %s2026_s11, 8192  ;;  %p2028_p3 = scmp.lt.s32.totalorder %s251_s7, %s2026_s11 }
  0x46   : > { %p2024_p0 = pneg %p2023_p13  ;;  %p2029_p1 = scmp.lt.s32.totalorder %s2027_s21, %s2020_s14 }
  0x48   : > { %p2030_p4 = por %p2029_p1, %p2028_p3 }
  0x4a   : > { %p2031_p6 = pnand %p2030_p4, %p2024_p0 }
  0x4c   : > { %2034 = shalt.err (!%p2031_p6)
}
  0x4d   : > { %s2615_s8 = smov 4   ;;  %s2616_s28 = smov 64  }
  0x4e   : > { %1821 = dma.hbm_to_vmem [thread:$0]  (!%p2280_p2), %s249_s24, 4096, %s251_s7, %s239_s10, %s2616_s28, %s2616_s28, %s2615_s8  }
  0x4f   : > { %262 = sbr.rel (%p2213_p8) target bundleno = 396 (0x18c), region = 36  ;;  %s2294_s13 = sand.u32 (!%p2213_p8), 1, %s2107_s16  }
  0x50   : > { %s1602_s11 = sshll.u32 (!%p2213_p8), %s2294_s13, 8  ;;  %s265_s29 = scalar_lea.sflag (!%p2213_p8), [#allocation4], %s2294_s13 }
  0x51   : > { %s2298_s5 = scalar_lea.vmem (!%p2213_p8), [#allocation3], %s1602_s11  ;;  %p2617_p5 = scmp.ne.s32.totalorder (!%p2213_p8), %s2609_s25, 0 }
  0x54   : > { %2086 = dma.done.wait (%p2617_p5), %s265_s29, 4096  }
  0x55   : > { %2088 = vsyncadd (%p2617_p5), %s265_s29, 4294963200  ;;  %p2618_p7 = scmp.ne.s32.totalorder %s2607_s23, 0 }
  0x57   : > { %2090 = dma.done.wait (%p2618_p7), [#allocation7], 1040  }
  0x58   : > { %2092 = vsyncadd (%p2618_p7), [#allocation7], 4294966256 }
  0x59   : > { %2094 = dma.done.wait (%p2618_p7), [#allocation10], 16  }
  0x5a   : > { %2096 = vsyncadd (%p2618_p7), [#allocation10], 4294967280  ;;  %v1889_v0 = vld [vmem:[#allocation6 + $0x38] sm:$0xff]   ;;  %v1890_v1 = vld [vmem:[#allocation6 + $0x30] sm:$0xff]   ;;  %s1606_s23 = sshll.u32 %s2294_s13, 9  ;;  %s1655_s27 = sshll.u32 %s2115_s18, 13 }
  0x5b   : > { %1696 = vmatprep.subr.bf16.mxu0 %v1889_v0  ;;  %1776 = vmatprep.subr.bf16.mxu1 %v1889_v0  ;;  %v1891_v2 = vld [vmem:[#allocation6 + $0x28] sm:$0xff]   ;;  %v1892_v3 = vld [vmem:[#allocation6 + $0x20] sm:$0xff]   ;;  %v1893_v6 = vld [vmem:[#allocation6 + $0x18] sm:$0xff]   ;;  %s2355_s25 = scalar_lea.vmem [#allocation11], %s1606_s23  ;;  %s2542_s18 = scalar_lea.hbm %s2601_s4, %s1655_s27 }
  0x5c   : > { %1697 = vmatpush3.bf16.msra.mxu0 %v1889_v0  ;;  %1784 = vmatpush3.bf16.msra.mxu1 %v1889_v0  ;;  %v1897_v4 = vld [vmem:[%s2298_s5] sm:$0xff]   ;;  %v1894_v7 = vld [vmem:[#allocation6 + $0x10] sm:$0xff]   ;;  %v1895_v8 = vld [vmem:[#allocation6 + $0x8] sm:$0xff]   ;;  %s1466_s10 = sshll.u32 %s2355_s25, 4  ;;  %s1452_s9 = scalar_lea.sflag [#allocation5], %s2294_s13  ;;  %s2544_s10 = int_to_ptr.vmem [resolvable:$true] %s1466_s10 }
  0x5d   : > { %1698 = vmatprep.subr.bf16.mxu0 %v1890_v1  ;;  %1777 = vmatprep.subr.bf16.mxu1 %v1890_v1  ;;  %v1898_v5 = vld [vmem:[%s2298_s5 + $0x80] sm:$0xff]   ;;  %v1899_v10 = vld [vmem:[%s2298_s5 + $0x8] sm:$0xff]   ;;  %v1901_v12 = vld [vmem:[%s2298_s5 + $0x10] sm:$0xff]   ;;  %s2035_s14 = scalar_lea.vmem %s2544_s10, 8192  ;;  %s2131_s6 = smov [#allocation11]  }
  0x5e   : > { %1712 = vmatprep.mubr.bf16.mxu0 %v1897_v4  ;;  %1744 = vmatprep.mubr.bf16.mxu1 %v1898_v5  ;;  %v1896_v9 = vld [vmem:[#allocation6] sm:$0xff]   ;;  %v1900_v11 = vld [vmem:[%s2298_s5 + $0x88] sm:$0xff]   ;;  %v1902_v13 = vld [vmem:[%s2298_s5 + $0x90] sm:$0xff]   ;;  %p2036_p8 = scmp.ne.s32.totalorder %s2544_s10, %s2035_s14  ;;  %s2039_s21 = sshll.u32 %s2131_s6, 4  ;;  %s2040_s21 = int_to_ptr.vmem [resolvable:$false] %s2039_s21 }
  0x5f   : > { %v1903_v14 = vld [vmem:[%s2298_s5 + $0x18] sm:$0xff]   ;;  %v1905_v16 = vld [vmem:[%s2298_s5 + $0x20] sm:$0xff]   ;;  %v1907_v18 = vld [vmem:[%s2298_s5 + $0x28] sm:$0xff]   ;;  %s2041_s8 = scalar_lea.vmem %s2040_s21, 16384  ;;  %p2042_p10 = scmp.lt.s32.totalorder %s2544_s10, %s2040_s21 }
  0x60   : > { %1699 = vmatpush3.bf16.msra.mxu0 %v1890_v1  ;;  %1785 = vmatpush3.bf16.msra.mxu1 %v1890_v1  ;;  %v1904_v15 = vld [vmem:[%s2298_s5 + $0x98] sm:$0xff]   ;;  %v1906_v17 = vld [vmem:[%s2298_s5 + $0xa0] sm:$0xff]   ;;  %v1908_v19 = vld [vmem:[%s2298_s5 + $0xa8] sm:$0xff]   ;;  %p2037_p9 = pnand %p2036_p8, %p2261_p11  ;;  %p2043_p12 = scmp.lt.s32.totalorder %s2041_s8, %s2035_s14 }
  0x61   : > { %1700 = vmatprep.subr.bf16.mxu0 %v1891_v2  ;;  %1778 = vmatprep.subr.bf16.mxu1 %v1891_v2  ;;  %v1909_v20 = vld [vmem:[%s2298_s5 + $0x30] sm:$0xff]   ;;  %v1911_v22 = vld [vmem:[%s2298_s5 + $0x38] sm:$0xff]   ;;  %v1913_v24 = vld [vmem:[%s2298_s5 + $0x40] sm:$0xff]  }
  0x62   : > { %v1910_v21 = vld [vmem:[%s2298_s5 + $0xb0] sm:$0xff]   ;;  %v1912_v23 = vld [vmem:[%s2298_s5 + $0xb8] sm:$0xff]   ;;  %v1914_v25 = vld [vmem:[%s2298_s5 + $0xc0] sm:$0xff]   ;;  %p2038_p2 = pneg %p2037_p9  ;;  %p2044_p13 = por %p2043_p12, %p2042_p10 }
  0x63   : > { %v1915_v26 = vld [vmem:[%s2298_s5 + $0x48] sm:$0xff]   ;;  %v1917_v28 = vld [vmem:[%s2298_s5 + $0x50] sm:$0xff]   ;;  %v1919_v30 = vld [vmem:[%s2298_s5 + $0x58] sm:$0xff]  }
  0x64   : > { %1701 = vmatpush3.bf16.msra.mxu0 %v1891_v2  ;;  %1786 = vmatpush3.bf16.msra.mxu1 %v1891_v2  ;;  %v1916_v27 = vld [vmem:[%s2298_s5 + $0xc8] sm:$0xff]   ;;  %v1918_v29 = vld [vmem:[%s2298_s5 + $0xd0] sm:$0xff]   ;;  %v1920_v31 = vld [vmem:[%s2298_s5 + $0xd8] sm:$0xff]   ;;  %p2045_p0 = pnand %p2044_p13, %p2038_p2 }
  0x65   : > { %1702 = vmatprep.subr.bf16.mxu0 %v1892_v3  ;;  %1779 = vmatprep.subr.bf16.mxu1 %v1892_v3  ;;  %v1921_v32 = vld [vmem:[%s2298_s5 + $0x60] sm:$0xff]   ;;  %v1923_v34 = vld [vmem:[%s2298_s5 + $0x68] sm:$0xff]   ;;  %v1925_v36 = vld [vmem:[%s2298_s5 + $0x70] sm:$0xff]  }
  0x66   : > { %v1922_v33 = vld [vmem:[%s2298_s5 + $0xe0] sm:$0xff]   ;;  %v1924_v35 = vld [vmem:[%s2298_s5 + $0xe8] sm:$0xff]   ;;  %v1926_v37 = vld [vmem:[%s2298_s5 + $0xf0] sm:$0xff]  }
  0x67   : > { %v1927_v38 = vld [vmem:[%s2298_s5 + $0x78] sm:$0xff]   ;;  %v2344_v40 = vld [vmem:[#allocation8] ss:$0 sm:$0xff]  ;;  %v2347_v42 = vld [vmem:[#allocation9] ss:$0 sm:$0xff] }
  0x68   : > { %1703 = vmatpush3.bf16.msra.mxu0 %v1892_v3  ;;  %1787 = vmatpush3.bf16.msra.mxu1 %v1892_v3  ;;  %v1928_v39 = vld [vmem:[%s2298_s5 + $0xf8] sm:$0xff]  }
  0x69   : > { %1704 = vmatprep.subr.bf16.mxu0 %v1893_v6  ;;  %1780 = vmatprep.subr.bf16.mxu1 %v1893_v6 }
  0x6c   : > { %1705 = vmatpush3.bf16.msra.mxu0 %v1893_v6  ;;  %1788 = vmatpush3.bf16.msra.mxu1 %v1893_v6 }
  0x6d   : > { %1706 = vmatprep.subr.bf16.mxu0 %v1894_v7  ;;  %1781 = vmatprep.subr.bf16.mxu1 %v1894_v7 }
  0x70   : > { %1707 = vmatpush3.bf16.msra.mxu0 %v1894_v7  ;;  %1789 = vmatpush3.bf16.msra.mxu1 %v1894_v7 }
  0x71   : > { %1708 = vmatprep.subr.bf16.mxu0 %v1895_v8  ;;  %1782 = vmatprep.subr.bf16.mxu1 %v1895_v8 }
  0x74   : > { %1709 = vmatpush3.bf16.msra.mxu0 %v1895_v8  ;;  %1790 = vmatpush3.bf16.msra.mxu1 %v1895_v8 }
  0x75   : > { %1710 = vmatprep.subr.bf16.mxu0 %v1896_v9  ;;  %1783 = vmatprep.subr.bf16.mxu1 %v1896_v9 }
  0x78   : > { %1711 = vmatpush3.bf16.msra.mxu0 %v1896_v9  ;;  %1791 = vmatpush3.bf16.msra.mxu1 %v1896_v9 }
  0x7b   : > { %1713 = vmatmul.mubr.bf16.vlgmr.msra.gmra.mxu0 %v1899_v10  ;;  %1745 = vmatmul.mubr.bf16.vlgmr.msra.gmra.mxu1 %v1900_v11 }
  0x7c   : > { %1716 = vmatprep.mubr.bf16.mxu0 %v1901_v12  ;;  %1748 = vmatprep.mubr.bf16.mxu1 %v1902_v13 }
  0x83   : > { %1717 = vmatmul.mubr.bf16.gmra.mxu0 %v1903_v14  ;;  %1749 = vmatmul.mubr.bf16.gmra.mxu1 %v1904_v15 }
  0x84   : > { %1720 = vmatprep.mubr.bf16.mxu0 %v1905_v16  ;;  %1752 = vmatprep.mubr.bf16.mxu1 %v1906_v17 }
  0x8b   : > { %1721 = vmatmul.mubr.bf16.gmra.mxu0 %v1907_v18  ;;  %1753 = vmatmul.mubr.bf16.gmra.mxu1 %v1908_v19 }
  0x8c   : > { %1724 = vmatprep.mubr.bf16.mxu0 %v1909_v20  ;;  %1756 = vmatprep.mubr.bf16.mxu1 %v1910_v21 }
  0x93   : > { %1725 = vmatmul.mubr.bf16.gmra.mxu0 %v1911_v22  ;;  %1757 = vmatmul.mubr.bf16.gmra.mxu1 %v1912_v23 }
  0x94   : > { %1728 = vmatprep.mubr.bf16.mxu0 %v1913_v24  ;;  %1760 = vmatprep.mubr.bf16.mxu1 %v1914_v25 }
  0x9b   : > { %1729 = vmatmul.mubr.bf16.gmra.mxu0 %v1915_v26  ;;  %1761 = vmatmul.mubr.bf16.gmra.mxu1 %v1916_v27 }
  0x9c   : > { %1732 = vmatprep.mubr.bf16.mxu0 %v1917_v28  ;;  %1764 = vmatprep.mubr.bf16.mxu1 %v1918_v29 }
  0xa3   : > { %1733 = vmatmul.mubr.bf16.gmra.mxu0 %v1919_v30  ;;  %1765 = vmatmul.mubr.bf16.gmra.mxu1 %v1920_v31 }
  0xa4   : > { %1736 = vmatprep.mubr.bf16.mxu0 %v1921_v32  ;;  %1768 = vmatprep.mubr.bf16.mxu1 %v1922_v33 }
  0xab   : > { %1737 = vmatmul.mubr.bf16.gmra.mxu0 %v1923_v34  ;;  %1769 = vmatmul.mubr.bf16.gmra.mxu1 %v1924_v35 }
  0xac   : > { %1740 = vmatprep.mubr.bf16.mxu0 %v1925_v36  ;;  %1772 = vmatprep.mubr.bf16.mxu1 %v1926_v37 }
  0xb3   : > { %1741 = vmatmul.mubr.bf16.gmra.mxu0 %v1927_v38  ;;  %1773 = vmatmul.mubr.bf16.gmra.mxu1 %v1928_v39 }
 0x13b   : > { %v1714_v41 = vpop.f32.mrf.mxu0  ;;  %v1746_v43 = vpop.f32.mrf.mxu1 }
 0x13c   : > { %v1254_v44 = vmul.f32 %v1714_v41, %v2344_v40  ;;  %v1286_v45 = vmul.f32 %v1746_v43, %v2344_v40 }
 0x13d   : > { %v795_v46 = vpop.f32.mrf.mxu0  ;;  %v923_v47 = vpop.f32.mrf.mxu1 }
 0x13e   : > { %v1325_v48 = vadd.f32 %v2347_v42, %v1254_v44  ;;  %v1357_v49 = vadd.f32 %v2347_v42, %v1286_v45  ;;  %v1252_v50 = vmul.f32 %v2344_v40, %v795_v46  ;;  %v1284_v51 = vmul.f32 %v2344_v40, %v923_v47 }
 0x13f   : > { %v1715_v52 = vpop.f32.mrf.mxu0  ;;  %v1747_v53 = vpop.f32.mrf.mxu1 }
 0x140   : > { %1389 = vst [vmem:[%s2355_s25 + $0x10] sm:$0xff] %v1325_v48  ;;  %1421 = vst [vmem:[%s2355_s25 + $0x110] sm:$0xff] %v1357_v49  ;;  %v1323_v54 = vadd.f32 %v2347_v42, %v1252_v50  ;;  %v1355_v55 = vadd.f32 %v2347_v42, %v1284_v51  ;;  %v1255_v56 = vmul.f32 %v1715_v52, %v2344_v40 }
 0x141   : > { %v1287_v57 = vmul.f32 %v1747_v53, %v2344_v40  ;;  %v798_v58 = vpop.f32.mrf.mxu0  ;;  %v926_v59 = vpop.f32.mrf.mxu1 }
 0x142   : > { %1387 = vst [vmem:[%s2355_s25] sm:$0xff] %v1323_v54  ;;  %1419 = vst [vmem:[%s2355_s25 + $0x100] sm:$0xff] %v1355_v55  ;;  %v1326_v60 = vadd.f32 %v2347_v42, %v1255_v56  ;;  %v1253_v62 = vmul.f32 %v2344_v40, %v798_v58  ;;  %v1285_v63 = vmul.f32 %v2344_v40, %v926_v59 }
 0x143   : > { %v1358_v61 = vadd.f32 %v2347_v42, %v1287_v57  ;;  %v1718_v0 = vpop.f32.mrf.mxu0  ;;  %v1750_v1 = vpop.f32.mrf.mxu1 }
 0x144   : > { %1390 = vst [vmem:[%s2355_s25 + $0x18] sm:$0xff] %v1326_v60  ;;  %v1324_v2 = vadd.f32 %v2347_v42, %v1253_v62  ;;  %v1356_v3 = vadd.f32 %v2347_v42, %v1285_v63  ;;  %v1258_v4 = vmul.f32 %v1718_v0, %v2344_v40  ;;  %v1290_v5 = vmul.f32 %v1750_v1, %v2344_v40 }
 0x145   : > { %1422 = vst [vmem:[%s2355_s25 + $0x118] sm:$0xff] %v1358_v61  ;;  %v811_v6 = vpop.f32.mrf.mxu0  ;;  %v939_v7 = vpop.f32.mrf.mxu1 }
 0x146   : > { %1388 = vst [vmem:[%s2355_s25 + $0x8] sm:$0xff] %v1324_v2  ;;  %1420 = vst [vmem:[%s2355_s25 + $0x108] sm:$0xff] %v1356_v3  ;;  %v1329_v8 = vadd.f32 %v2347_v42, %v1258_v4  ;;  %v1361_v9 = vadd.f32 %v2347_v42, %v1290_v5  ;;  %v1256_v10 = vmul.f32 %v2344_v40, %v811_v6 }
 0x147   : > { %v1288_v11 = vmul.f32 %v2344_v40, %v939_v7  ;;  %v1719_v12 = vpop.f32.mrf.mxu0  ;;  %v1751_v13 = vpop.f32.mrf.mxu1 }
 0x148   : > { %1393 = vst [vmem:[%s2355_s25 + $0x30] sm:$0xff] %v1329_v8  ;;  %1425 = vst [vmem:[%s2355_s25 + $0x130] sm:$0xff] %v1361_v9  ;;  %v1327_v14 = vadd.f32 %v2347_v42, %v1256_v10  ;;  %v1259_v16 = vmul.f32 %v1719_v12, %v2344_v40  ;;  %v1291_v17 = vmul.f32 %v1751_v13, %v2344_v40 }
 0x149   : > { %v1359_v15 = vadd.f32 %v2347_v42, %v1288_v11  ;;  %v814_v18 = vpop.f32.mrf.mxu0  ;;  %v942_v19 = vpop.f32.mrf.mxu1 }
 0x14a   : > { %1391 = vst [vmem:[%s2355_s25 + $0x20] sm:$0xff] %v1327_v14  ;;  %v1330_v20 = vadd.f32 %v2347_v42, %v1259_v16  ;;  %v1362_v21 = vadd.f32 %v2347_v42, %v1291_v17  ;;  %v1257_v22 = vmul.f32 %v2344_v40, %v814_v18  ;;  %v1289_v23 = vmul.f32 %v2344_v40, %v942_v19 }
 0x14b   : > { %1423 = vst [vmem:[%s2355_s25 + $0x120] sm:$0xff] %v1359_v15  ;;  %v1722_v24 = vpop.f32.mrf.mxu0  ;;  %v1754_v25 = vpop.f32.mrf.mxu1 }
 0x14c   : > { %1394 = vst [vmem:[%s2355_s25 + $0x38] sm:$0xff] %v1330_v20  ;;  %1426 = vst [vmem:[%s2355_s25 + $0x138] sm:$0xff] %v1362_v21  ;;  %v1328_v26 = vadd.f32 %v2347_v42, %v1257_v22  ;;  %v1360_v27 = vadd.f32 %v2347_v42, %v1289_v23  ;;  %v1262_v28 = vmul.f32 %v1722_v24, %v2344_v40 }
 0x14d   : > { %v1294_v29 = vmul.f32 %v1754_v25, %v2344_v40  ;;  %v827_v30 = vpop.f32.mrf.mxu0  ;;  %v955_v31 = vpop.f32.mrf.mxu1 }
 0x14e   : > { %1392 = vst [vmem:[%s2355_s25 + $0x28] sm:$0xff] %v1328_v26  ;;  %1424 = vst [vmem:[%s2355_s25 + $0x128] sm:$0xff] %v1360_v27  ;;  %v1333_v32 = vadd.f32 %v2347_v42, %v1262_v28  ;;  %v1260_v34 = vmul.f32 %v2344_v40, %v827_v30  ;;  %v1292_v35 = vmul.f32 %v2344_v40, %v955_v31 }
 0x14f   : > { %v1365_v33 = vadd.f32 %v2347_v42, %v1294_v29  ;;  %v1723_v36 = vpop.f32.mrf.mxu0  ;;  %v1755_v37 = vpop.f32.mrf.mxu1 }
 0x150   : > { %1397 = vst [vmem:[%s2355_s25 + $0x50] sm:$0xff] %v1333_v32  ;;  %v1331_v38 = vadd.f32 %v2347_v42, %v1260_v34  ;;  %v1363_v39 = vadd.f32 %v2347_v42, %v1292_v35  ;;  %v1263_v41 = vmul.f32 %v1723_v36, %v2344_v40  ;;  %v1295_v43 = vmul.f32 %v1755_v37, %v2344_v40 }
 0x151   : > { %1429 = vst [vmem:[%s2355_s25 + $0x150] sm:$0xff] %v1365_v33  ;;  %v830_v44 = vpop.f32.mrf.mxu0  ;;  %v958_v45 = vpop.f32.mrf.mxu1 }
 0x152   : > { %1395 = vst [vmem:[%s2355_s25 + $0x40] sm:$0xff] %v1331_v38  ;;  %1427 = vst [vmem:[%s2355_s25 + $0x140] sm:$0xff] %v1363_v39  ;;  %v1334_v46 = vadd.f32 %v2347_v42, %v1263_v41  ;;  %v1366_v47 = vadd.f32 %v2347_v42, %v1295_v43  ;;  %v1261_v48 = vmul.f32 %v2344_v40, %v830_v44 }
 0x153   : > { %v1293_v49 = vmul.f32 %v2344_v40, %v958_v45  ;;  %v1726_v50 = vpop.f32.mrf.mxu0  ;;  %v1758_v51 = vpop.f32.mrf.mxu1 }
 0x154   : > { %1398 = vst [vmem:[%s2355_s25 + $0x58] sm:$0xff] %v1334_v46  ;;  %1430 = vst [vmem:[%s2355_s25 + $0x158] sm:$0xff] %v1366_v47  ;;  %v1332_v52 = vadd.f32 %v2347_v42, %v1261_v48  ;;  %v1266_v54 = vmul.f32 %v1726_v50, %v2344_v40  ;;  %v1298_v55 = vmul.f32 %v1758_v51, %v2344_v40 }
 0x155   : > { %v1364_v53 = vadd.f32 %v2347_v42, %v1293_v49  ;;  %v843_v56 = vpop.f32.mrf.mxu0  ;;  %v971_v57 = vpop.f32.mrf.mxu1 }
 0x156   : > { %1396 = vst [vmem:[%s2355_s25 + $0x48] sm:$0xff] %v1332_v52  ;;  %v1337_v58 = vadd.f32 %v2347_v42, %v1266_v54  ;;  %v1369_v59 = vadd.f32 %v2347_v42, %v1298_v55  ;;  %v1264_v60 = vmul.f32 %v2344_v40, %v843_v56  ;;  %v1296_v61 = vmul.f32 %v2344_v40, %v971_v57 }
 0x157   : > { %1428 = vst [vmem:[%s2355_s25 + $0x148] sm:$0xff] %v1364_v53  ;;  %v1727_v62 = vpop.f32.mrf.mxu0  ;;  %v1759_v63 = vpop.f32.mrf.mxu1 }
 0x158   : > { %1401 = vst [vmem:[%s2355_s25 + $0x70] sm:$0xff] %v1337_v58  ;;  %1433 = vst [vmem:[%s2355_s25 + $0x170] sm:$0xff] %v1369_v59  ;;  %v1335_v0 = vadd.f32 %v2347_v42, %v1264_v60  ;;  %v1367_v1 = vadd.f32 %v2347_v42, %v1296_v61  ;;  %v1267_v2 = vmul.f32 %v1727_v62, %v2344_v40 }
 0x159   : > { %v1299_v3 = vmul.f32 %v1759_v63, %v2344_v40  ;;  %v846_v4 = vpop.f32.mrf.mxu0  ;;  %v974_v5 = vpop.f32.mrf.mxu1 }
 0x15a   : > { %1399 = vst [vmem:[%s2355_s25 + $0x60] sm:$0xff] %v1335_v0  ;;  %1431 = vst [vmem:[%s2355_s25 + $0x160] sm:$0xff] %v1367_v1  ;;  %v1338_v6 = vadd.f32 %v2347_v42, %v1267_v2  ;;  %v1265_v8 = vmul.f32 %v2344_v40, %v846_v4  ;;  %v1297_v9 = vmul.f32 %v2344_v40, %v974_v5 }
 0x15b   : > { %v1370_v7 = vadd.f32 %v2347_v42, %v1299_v3  ;;  %v1730_v10 = vpop.f32.mrf.mxu0  ;;  %v1762_v11 = vpop.f32.mrf.mxu1 }
 0x15c   : > { %1402 = vst [vmem:[%s2355_s25 + $0x78] sm:$0xff] %v1338_v6  ;;  %v1336_v12 = vadd.f32 %v2347_v42, %v1265_v8  ;;  %v1368_v13 = vadd.f32 %v2347_v42, %v1297_v9  ;;  %v1270_v14 = vmul.f32 %v1730_v10, %v2344_v40  ;;  %v1302_v15 = vmul.f32 %v1762_v11, %v2344_v40 }
 0x15d   : > { %1434 = vst [vmem:[%s2355_s25 + $0x178] sm:$0xff] %v1370_v7  ;;  %v859_v16 = vpop.f32.mrf.mxu0  ;;  %v987_v17 = vpop.f32.mrf.mxu1 }
 0x15e   : > { %1400 = vst [vmem:[%s2355_s25 + $0x68] sm:$0xff] %v1336_v12  ;;  %1432 = vst [vmem:[%s2355_s25 + $0x168] sm:$0xff] %v1368_v13  ;;  %v1341_v18 = vadd.f32 %v2347_v42, %v1270_v14  ;;  %v1373_v19 = vadd.f32 %v2347_v42, %v1302_v15  ;;  %v1268_v20 = vmul.f32 %v2344_v40, %v859_v16 }
 0x15f   : > { %v1300_v21 = vmul.f32 %v2344_v40, %v987_v17  ;;  %v1731_v22 = vpop.f32.mrf.mxu0  ;;  %v1763_v23 = vpop.f32.mrf.mxu1 }
 0x160   : > { %1405 = vst [vmem:[%s2355_s25 + $0x90] sm:$0xff] %v1341_v18  ;;  %1437 = vst [vmem:[%s2355_s25 + $0x190] sm:$0xff] %v1373_v19  ;;  %v1339_v24 = vadd.f32 %v2347_v42, %v1268_v20  ;;  %v1271_v26 = vmul.f32 %v1731_v22, %v2344_v40  ;;  %v1303_v27 = vmul.f32 %v1763_v23, %v2344_v40 }
 0x161   : > { %v1371_v25 = vadd.f32 %v2347_v42, %v1300_v21  ;;  %v862_v28 = vpop.f32.mrf.mxu0  ;;  %v990_v29 = vpop.f32.mrf.mxu1 }
 0x162   : > { %1403 = vst [vmem:[%s2355_s25 + $0x80] sm:$0xff] %v1339_v24  ;;  %v1342_v30 = vadd.f32 %v2347_v42, %v1271_v26  ;;  %v1374_v31 = vadd.f32 %v2347_v42, %v1303_v27  ;;  %v1269_v32 = vmul.f32 %v2344_v40, %v862_v28  ;;  %v1301_v33 = vmul.f32 %v2344_v40, %v990_v29 }
 0x163   : > { %1435 = vst [vmem:[%s2355_s25 + $0x180] sm:$0xff] %v1371_v25  ;;  %v1734_v34 = vpop.f32.mrf.mxu0  ;;  %v1766_v35 = vpop.f32.mrf.mxu1 }
 0x164   : > { %1406 = vst [vmem:[%s2355_s25 + $0x98] sm:$0xff] %v1342_v30  ;;  %1438 = vst [vmem:[%s2355_s25 + $0x198] sm:$0xff] %v1374_v31  ;;  %v1340_v36 = vadd.f32 %v2347_v42, %v1269_v32  ;;  %v1372_v37 = vadd.f32 %v2347_v42, %v1301_v33  ;;  %v1274_v38 = vmul.f32 %v1734_v34, %v2344_v40 }
 0x165   : > { %v1306_v39 = vmul.f32 %v1766_v35, %v2344_v40  ;;  %v875_v41 = vpop.f32.mrf.mxu0  ;;  %v1003_v43 = vpop.f32.mrf.mxu1 }
 0x166   : > { %1404 = vst [vmem:[%s2355_s25 + $0x88] sm:$0xff] %v1340_v36  ;;  %1436 = vst [vmem:[%s2355_s25 + $0x188] sm:$0xff] %v1372_v37  ;;  %v1345_v44 = vadd.f32 %v2347_v42, %v1274_v38  ;;  %v1272_v46 = vmul.f32 %v2344_v40, %v875_v41  ;;  %v1304_v47 = vmul.f32 %v2344_v40, %v1003_v43 }
 0x167   : > { %v1377_v45 = vadd.f32 %v2347_v42, %v1306_v39  ;;  %v1735_v48 = vpop.f32.mrf.mxu0  ;;  %v1767_v49 = vpop.f32.mrf.mxu1 }
 0x168   : > { %1409 = vst [vmem:[%s2355_s25 + $0xb0] sm:$0xff] %v1345_v44  ;;  %v1343_v50 = vadd.f32 %v2347_v42, %v1272_v46  ;;  %v1375_v51 = vadd.f32 %v2347_v42, %v1304_v47  ;;  %v1275_v52 = vmul.f32 %v1735_v48, %v2344_v40  ;;  %v1307_v53 = vmul.f32 %v1767_v49, %v2344_v40 }
 0x169   : > { %1441 = vst [vmem:[%s2355_s25 + $0x1b0] sm:$0xff] %v1377_v45  ;;  %v878_v54 = vpop.f32.mrf.mxu0  ;;  %v1006_v55 = vpop.f32.mrf.mxu1 }
 0x16a   : > { %1407 = vst [vmem:[%s2355_s25 + $0xa0] sm:$0xff] %v1343_v50  ;;  %1439 = vst [vmem:[%s2355_s25 + $0x1a0] sm:$0xff] %v1375_v51  ;;  %v1346_v56 = vadd.f32 %v2347_v42, %v1275_v52  ;;  %v1378_v57 = vadd.f32 %v2347_v42, %v1307_v53  ;;  %v1273_v58 = vmul.f32 %v2344_v40, %v878_v54 }
 0x16b   : > { %v1305_v59 = vmul.f32 %v2344_v40, %v1006_v55  ;;  %v1738_v60 = vpop.f32.mrf.mxu0  ;;  %v1770_v61 = vpop.f32.mrf.mxu1 }
 0x16c   : > { %1410 = vst [vmem:[%s2355_s25 + $0xb8] sm:$0xff] %v1346_v56  ;;  %1442 = vst [vmem:[%s2355_s25 + $0x1b8] sm:$0xff] %v1378_v57  ;;  %v1344_v62 = vadd.f32 %v2347_v42, %v1273_v58  ;;  %v1278_v0 = vmul.f32 %v1738_v60, %v2344_v40  ;;  %v1310_v1 = vmul.f32 %v1770_v61, %v2344_v40 }
 0x16d   : > { %v1376_v63 = vadd.f32 %v2347_v42, %v1305_v59  ;;  %v891_v2 = vpop.f32.mrf.mxu0  ;;  %v1019_v3 = vpop.f32.mrf.mxu1 }
 0x16e   : > { %1408 = vst [vmem:[%s2355_s25 + $0xa8] sm:$0xff] %v1344_v62  ;;  %v1349_v4 = vadd.f32 %v2347_v42, %v1278_v0  ;;  %v1381_v5 = vadd.f32 %v2347_v42, %v1310_v1  ;;  %v1276_v6 = vmul.f32 %v2344_v40, %v891_v2  ;;  %v1308_v7 = vmul.f32 %v2344_v40, %v1019_v3 }
 0x16f   : > { %1440 = vst [vmem:[%s2355_s25 + $0x1a8] sm:$0xff] %v1376_v63  ;;  %v1739_v8 = vpop.f32.mrf.mxu0  ;;  %v1771_v9 = vpop.f32.mrf.mxu1 }
 0x170   : > { %1413 = vst [vmem:[%s2355_s25 + $0xd0] sm:$0xff] %v1349_v4  ;;  %1445 = vst [vmem:[%s2355_s25 + $0x1d0] sm:$0xff] %v1381_v5  ;;  %v1347_v10 = vadd.f32 %v2347_v42, %v1276_v6  ;;  %v1379_v11 = vadd.f32 %v2347_v42, %v1308_v7  ;;  %v1279_v12 = vmul.f32 %v1739_v8, %v2344_v40 }
 0x171   : > { %v1311_v13 = vmul.f32 %v1771_v9, %v2344_v40  ;;  %v894_v14 = vpop.f32.mrf.mxu0  ;;  %v1022_v15 = vpop.f32.mrf.mxu1 }
 0x172   : > { %1411 = vst [vmem:[%s2355_s25 + $0xc0] sm:$0xff] %v1347_v10  ;;  %1443 = vst [vmem:[%s2355_s25 + $0x1c0] sm:$0xff] %v1379_v11  ;;  %v1350_v16 = vadd.f32 %v2347_v42, %v1279_v12  ;;  %v1277_v18 = vmul.f32 %v2344_v40, %v894_v14  ;;  %v1309_v19 = vmul.f32 %v2344_v40, %v1022_v15 }
 0x173   : > { %v1382_v17 = vadd.f32 %v2347_v42, %v1311_v13  ;;  %v1742_v20 = vpop.f32.mrf.mxu0  ;;  %v1774_v21 = vpop.f32.mrf.mxu1 }
 0x174   : > { %1414 = vst [vmem:[%s2355_s25 + $0xd8] sm:$0xff] %v1350_v16  ;;  %v1348_v22 = vadd.f32 %v2347_v42, %v1277_v18  ;;  %v1380_v23 = vadd.f32 %v2347_v42, %v1309_v19  ;;  %v1282_v24 = vmul.f32 %v1742_v20, %v2344_v40  ;;  %v1314_v25 = vmul.f32 %v1774_v21, %v2344_v40 }
 0x175   : > { %1446 = vst [vmem:[%s2355_s25 + $0x1d8] sm:$0xff] %v1382_v17  ;;  %v907_v26 = vpop.f32.mrf.mxu0  ;;  %v1035_v27 = vpop.f32.mrf.mxu1 }
 0x176   : > { %1412 = vst [vmem:[%s2355_s25 + $0xc8] sm:$0xff] %v1348_v22  ;;  %1444 = vst [vmem:[%s2355_s25 + $0x1c8] sm:$0xff] %v1380_v23  ;;  %v1353_v28 = vadd.f32 %v2347_v42, %v1282_v24  ;;  %v1385_v29 = vadd.f32 %v2347_v42, %v1314_v25  ;;  %v1280_v30 = vmul.f32 %v2344_v40, %v907_v26 }
 0x177   : > { %v1312_v31 = vmul.f32 %v2344_v40, %v1035_v27  ;;  %v1743_v32 = vpop.f32.mrf.mxu0  ;;  %v1775_v33 = vpop.f32.mrf.mxu1 }
 0x178   : > { %1417 = vst [vmem:[%s2355_s25 + $0xf0] sm:$0xff] %v1353_v28  ;;  %1449 = vst [vmem:[%s2355_s25 + $0x1f0] sm:$0xff] %v1385_v29  ;;  %v1351_v34 = vadd.f32 %v2347_v42, %v1280_v30  ;;  %v1283_v36 = vmul.f32 %v1743_v32, %v2344_v40  ;;  %v1315_v37 = vmul.f32 %v1775_v33, %v2344_v40 }
 0x179   : > { %v1383_v35 = vadd.f32 %v2347_v42, %v1312_v31  ;;  %v910_v38 = vpop.f32.mrf.mxu0  ;;  %v1038_v39 = vpop.f32.mrf.mxu1 }
 0x17a   : > { %1415 = vst [vmem:[%s2355_s25 + $0xe0] sm:$0xff] %v1351_v34  ;;  %v1354_v41 = vadd.f32 %v2347_v42, %v1283_v36  ;;  %v1386_v43 = vadd.f32 %v2347_v42, %v1315_v37  ;;  %v1281_v44 = vmul.f32 %v2344_v40, %v910_v38  ;;  %v1313_v45 = vmul.f32 %v2344_v40, %v1038_v39 }
 0x17b   : > { %1447 = vst [vmem:[%s2355_s25 + $0x1e0] sm:$0xff] %v1383_v35 }
 0x17c   : > { %1418 = vst [vmem:[%s2355_s25 + $0xf8] sm:$0xff] %v1354_v41  ;;  %1450 = vst [vmem:[%s2355_s25 + $0x1f8] sm:$0xff] %v1386_v43  ;;  %v1352_v46 = vadd.f32 %v2347_v42, %v1281_v44  ;;  %v1384_v47 = vadd.f32 %v2347_v42, %v1313_v45 }
 0x17e   : > { %1416 = vst [vmem:[%s2355_s25 + $0xe8] sm:$0xff] %v1352_v46  ;;  %1448 = vst [vmem:[%s2355_s25 + $0x1e8] sm:$0xff] %v1384_v47 }
 0x17f   : > { %2048 = shalt.err (!%p2045_p0)
}
 0x180   : > { %s2049_s28 = scalar_lea.hbm %s2542_s18, 8192  ;;  %s2053_s5 = scalar_lea.hbm %s2601_s4, 262144 }
 0x181   : > { %p2050_p3 = scmp.ne.s32.totalorder %s2542_s18, %s2049_s28  ;;  %p2054_p6 = scmp.lt.s32.totalorder %s2542_s18, %s2601_s4 }
 0x182   : > { %p2055_p5 = scmp.lt.s32.totalorder %s2053_s5, %s2049_s28 }
 0x183   : > { %p2051_p1 = pnand %p2050_p3, %p2261_p11 }
 0x184   : > { %p2056_p7 = por %p2055_p5, %p2054_p6 }
 0x185   : > { %p2052_p4 = pneg %p2051_p1 }
 0x187   : > { %p2057_p8 = pnand %p2056_p7, %p2052_p4 }
 0x189   : > { %2060 = shalt.err (!%p2057_p8)
}
 0x18a   : > { %s2132_s27 = smov 128   ;;  %s2133_s24 = smov 8  }
 0x18b   : > { %1806 = dma.vmem_to_hbm [thread:$0]  (%p2261_p11), %s2544_s10, 8192, %s2542_s18, %s1452_s9, %s2132_s27, %s2132_s27, %s2133_s24  }
 0x18c PF: > { %p1833_p9 = scmp.ge.s32.totalorder %s2123_s20, 2  ;;  %s1481_s7 = sand.u32 1, %s2103_s15  }
 0x18d   : > { %p2619_p2 = scmp.ne.s32.totalorder %s2610_s26, 0  ;;  %s1482_s14 = scalar_lea.sflag [#allocation5], %s1481_s7 }
 0x18f   : > { %p1823_p10 = pnand %p1833_p9, %p2619_p2 }
 0x191   : > { %p1824_p12 = pneg %p1823_p10 }
 0x193   : > { %2098 = dma.done.wait (%p1824_p12), %s1482_s14, 8192  }
 0x194   : > { %2100 = vsyncadd (%p1824_p12), %s1482_s14, 4294959104  ;;  %s22_s20 = sadd.s32 1, %s2123_s20   ;;  %s2620_s15 = smov %s2107_s16 }
 0x195   : > { %p19_p13 = scmp.ge.s32.totalorder %s22_s20, 34   ;;  %s2621_s16 = smov %s2111_s17 }
 0x196   : > { %s2622_s17 = smov %s2273_s22  ;;  %s2623_s18 = smov %s2119_s19 }
 0x197   : > { %s2624_s19 = smov %s2626_s12  ;;  %21 = sbr.rel (!%p19_p13) target bundleno = 8 (0x8), region = 104 }
 0x19c   :  { %1487 = vsyncpa [#allocation4], 1 }
 0x19d   :  { %1489 = vsyncpa [#allocation4 + $0x1], 1 }
 0x19e   :  { %1490 = vsyncpa [#allocation7], 1 }
 0x19f   :  { %1491 = vsyncpa [#allocation10], 1 }
 0x1a0   :  { %1492 = vsyncpa [#allocation5], 1 }
 0x1a1   :  { %1494 = vsyncpa [#allocation5 + $0x1], 1 }

</bundles_post_ra>
